<compile_context>
chip_gen: v7x
topology: tpu7x:2x2x1
jax: 0.10.0
libtpu: 0.0.40
codegen_flags: <defaults>
</compile_context>

<pallas_src>
import functools

import jax
import jax.numpy as jnp
from jax.experimental import pallas as pl
from jax.experimental.pallas import tpu as pltpu


def _psi2d_copy_kernel(x_ref, o_ref):
    """Lane-aligned path: pure copy, h_in interleave handled by the grid.

    x_ref block : (1, TH, 1, Wo, bs*C)
    o_ref block : (1, TH, Wo, bs*C)      (lane block `hin` of the D dim)
    """
    o_ref[0, :, :, :] = x_ref[0, :, 0, :, :]


def _psi2d_interleave_kernel(x_ref, o_ref, *, block_size, C):
    """General path: interleave the bs row-offsets into the depth (lane) dim.

    x_ref block : (1, TH, bs, Wo, bs*C)
    o_ref block : (1, TH, Wo, bs*bs*C)
    Depth ordering d = h_in*(bs*C) + w_in*C + c (matches torch view/stack).
    """
    bs = block_size
    bsC = bs * C
    for h_in in range(bs):  # bs is a small static constant
        o_ref[0, :, :, h_in * bsC:(h_in + 1) * bsC] = x_ref[0, :, h_in, :, :]


def _choose_row_tile(Ho, Wo, D, itemsize, budget_bytes):
    """Largest divisor of Ho such that double-buffered in+out tiles fit budget."""
    # Per output row: input slab (Wo*D elems) + output slab (Wo*D elems),
    # times 2 for automatic double-buffering.
    per_row = 4 * Wo * D * itemsize
    cap = max(1, budget_bytes // max(1, per_row))
    th = 1
    for d in range(1, Ho + 1):
        if Ho % d == 0 and d <= cap:
            th = d
    return th


def psi_forward(x_nchw, block_size, *, vmem_budget_bytes=16 * 1024 * 1024):
    """Pallas implementation of psi(block_size, dimensions=2).forward."""
    bs = block_size
    B, C, H, W = x_nchw.shape
    assert H % bs == 0 and W % bs == 0
    Ho, Wo = H // bs, W // bs
    bsC = bs * C
    D = bs * bsC

    # glue: NCHW -> NHWC -> (B, Ho, bs, Wo, bs*C); transpose+reshape fuse into
    # a single XLA copy.
    x_blk = jnp.transpose(x_nchw, (0, 2, 3, 1)).reshape(B, Ho, bs, Wo, bsC)

    itemsize = jnp.dtype(x_nchw.dtype).itemsize
    TH = _choose_row_tile(Ho, Wo, D, itemsize, vmem_budget_bytes)
    nH = Ho // TH

    if bsC % 128 == 0:
        # Lane-aligned: h_in becomes a grid axis; body is a straight copy and
        # every store is a full-width, 128-aligned block store.
        grid = (B, nH, bs)
        in_specs = [
            pl.BlockSpec((1, TH, 1, Wo, bsC),
                         lambda b, h, hin: (b, h, hin, 0, 0)),
        ]
        out_specs = pl.BlockSpec((1, TH, Wo, bsC),
                                 lambda b, h, hin: (b, h, 0, hin))
        kernel = _psi2d_copy_kernel
        dims = ("parallel", "parallel", "parallel")
    else:
        # Small / unaligned bs*C: keep full trailing dims in the blocks
        # (layout-legal) and interleave h_in inside the kernel.
        grid = (B, nH)
        in_specs = [
            pl.BlockSpec((1, TH, bs, Wo, bsC),
                         lambda b, h: (b, h, 0, 0, 0)),
        ]
        out_specs = pl.BlockSpec((1, TH, Wo, D),
                                 lambda b, h: (b, h, 0, 0))
        kernel = functools.partial(_psi2d_interleave_kernel,
                                   block_size=bs, C=C)
        dims = ("parallel", "parallel")

    out_nhwc = pl.pallas_call(
        kernel,
        out_shape=jax.ShapeDtypeStruct((B, Ho, Wo, D), x_nchw.dtype),
        grid_spec=pltpu.PrefetchScalarGridSpec(
            num_scalar_prefetch=0,
            grid=grid,
            in_specs=in_specs,
            out_specs=out_specs,
        ),
        compiler_params=pltpu.CompilerParams(
            dimension_semantics=dims,
            vmem_limit_bytes=48 * 1024 * 1024,
        ),
    )(x_blk)

    # glue: back to PyTorch's NCHW output convention.
    return jnp.transpose(out_nhwc, (0, 3, 1, 2))            # (B, D, Ho, Wo)


def psi_forward_reference(x_nchw, block_size):
    """Literal jnp transcription of the torch forward (dimensions == 2)."""
    bs = block_size
    out = jnp.transpose(x_nchw, (0, 2, 3, 1))                # (B, H, W, C)
    B, H, W, C = out.shape
    d_depth = C * bs * bs
    d_height = H // bs
    t_1 = jnp.split(out, W // bs, axis=2)                    # each (B, H, bs, C)
    stack = [t.reshape(B, d_height, d_depth) for t in t_1]
    out = jnp.stack(stack, axis=1)                            # (B, W/bs, H/bs, d_depth)
    out = jnp.transpose(out, (0, 2, 1, 3))
    out = jnp.transpose(out, (0, 3, 1, 2))
    return out


if __name__ == "__main__":
    key = jax.random.PRNGKey(0)
    k1, k2 = jax.random.split(key)

    # Case 1: small shape (bs*C = 8, not lane-aligned) -> in-kernel interleave path.
    B, C, H, W, bs = 2, 4, 16, 16, 2
    x = jax.random.normal(k1, (B, C, H, W), dtype=jnp.float32)
    out = jax.block_until_ready(psi_forward(x, bs))
    ref = psi_forward_reference(x, bs)
    assert out.shape == (B, C * bs * bs, H // bs, W // bs), out.shape
    assert out.dtype == x.dtype
    assert jnp.array_equal(out, ref), "Pallas psi output mismatch vs reference (small case)"

    # Case 2: bs*C = 128 (lane-aligned) -> pure-copy path with h_in grid axis.
    B2, C2, H2, W2, bs2 = 2, 64, 16, 16, 2
    x2 = jax.random.normal(k2, (B2, C2, H2, W2), dtype=jnp.float32)
    out2 = jax.block_until_ready(psi_forward(x2, bs2))
    ref2 = psi_forward_reference(x2, bs2)
    assert out2.shape == (B2, C2 * bs2 * bs2, H2 // bs2, W2 // bs2), out2.shape
    assert out2.dtype == x2.dtype
    assert jnp.array_equal(out2, ref2), "Pallas psi output mismatch vs reference (aligned case)"

    print("KERNEL_OK")
</pallas_src>

<mosaic_0001>
module attributes {stable_mosaic.version = 11 : i64} {
  func.func @_psi2d_interleave_kernel(%arg0: i32, %arg1: i32, %arg2: memref<1x8x2x8x8xf32, #tpu.memory_space<vmem>>, %arg3: memref<1x8x8x16xf32, #tpu.memory_space<vmem>>) attributes {dimension_semantics = [#tpu.dimension_semantics<parallel>, #tpu.dimension_semantics<parallel>], iteration_bounds = array<i64: 2, 1>, scalar_prefetch = 0 : i64, scratch_operands = 0 : i64, tpu.core_type = #tpu.core_type<tc>, window_params = [{transform_indices = @transform_0, window_bounds = array<i64: 1, 8, 2, 8, 8>}, {transform_indices = @transform_1, window_bounds = array<i64: 1, 8, 8, 16>}]} {
    %c0 = arith.constant 0 : index
    %c0_0 = arith.constant 0 : index
    %c0_1 = arith.constant 0 : index
    %c0_2 = arith.constant 0 : index
    %c0_3 = arith.constant 0 : index
    %0 = vector.load %arg2[%c0, %c0_0, %c0_1, %c0_2, %c0_3] : memref<1x8x2x8x8xf32, #tpu.memory_space<vmem>>, vector<1x8x1x8x8xf32>
    %1 = vector.shape_cast %0 : vector<1x8x1x8x8xf32> to vector<8x8x8xf32>
    %c0_4 = arith.constant 0 : index
    %c0_5 = arith.constant 0 : index
    %c0_6 = arith.constant 0 : index
    %c0_7 = arith.constant 0 : index
    %2 = vector.load %arg3[%c0_4, %c0_5, %c0_6, %c0_7] : memref<1x8x8x16xf32, #tpu.memory_space<vmem>>, vector<1x8x8x8xf32>
    %3 = vector.shape_cast %2 : vector<1x8x8x8xf32> to vector<8x8x8xf32>
    %4 = vector.shape_cast %1 : vector<8x8x8xf32> to vector<1x8x8x8xf32>
    tpu.vector_store %arg3[%c0_4, %c0_5, %c0_6, %c0_7], %4 {strides = array<i32>} : memref<1x8x8x16xf32, #tpu.memory_space<vmem>>, vector<1x8x8x8xf32>,
    %c0_8 = arith.constant 0 : index
    %c0_9 = arith.constant 0 : index
    %c1 = arith.constant 1 : index
    %c0_10 = arith.constant 0 : index
    %c0_11 = arith.constant 0 : index
    %5 = vector.load %arg2[%c0_8, %c0_9, %c1, %c0_10, %c0_11] : memref<1x8x2x8x8xf32, #tpu.memory_space<vmem>>, vector<1x8x1x8x8xf32>
    %6 = vector.shape_cast %5 : vector<1x8x1x8x8xf32> to vector<8x8x8xf32>
    %c0_12 = arith.constant 0 : index
    %c0_13 = arith.constant 0 : index
    %c0_14 = arith.constant 0 : index
    %c8 = arith.constant 8 : index
    %7 = vector.load %arg3[%c0_12, %c0_13, %c0_14, %c8] : memref<1x8x8x16xf32, #tpu.memory_space<vmem>>, vector<1x8x8x8xf32>
    %8 = vector.shape_cast %7 : vector<1x8x8x8xf32> to vector<8x8x8xf32>
    %9 = vector.shape_cast %6 : vector<8x8x8xf32> to vector<1x8x8x8xf32>
    tpu.vector_store %arg3[%c0_12, %c0_13, %c0_14, %c8], %9 {strides = array<i32>} : memref<1x8x8x16xf32, #tpu.memory_space<vmem>>, vector<1x8x8x8xf32>,
    return
  }
  func.func @transform_0(%arg0: i32, %arg1: i32) -> (i32, i32, i32, i32, i32) {
    %c0_i32 = arith.constant 0 : i32
    %c0_i32_0 = arith.constant 0 : i32
    %c0_i32_1 = arith.constant 0 : i32
    %c0_i32_2 = arith.constant 0 : i32
    return %arg0, %arg1, %c0_i32, %c0_i32_0, %c0_i32_1 : i32, i32, i32, i32, i32
  }
  func.func @transform_1(%arg0: i32, %arg1: i32) -> (i32, i32, i32, i32) {
    %c0_i32 = arith.constant 0 : i32
    %c0_i32_0 = arith.constant 0 : i32
    %c0_i32_1 = arith.constant 0 : i32
    return %arg0, %arg1, %c0_i32, %c0_i32_0 : i32, i32, i32, i32
  }
}

</mosaic_0001>

<bundles_post_ra>
// kernel: tpu_custom_call.1
= control target key start
LH: loop header
LB: loop body
LE: loop exit
PB: predicated region body
PF: predicated region fallthrough
CT: control target
= control target key end

     0   :  { %6 = vsyncpa [#allocation3], 0  ;;  %s785_s0 = inlined_call_operand.hbm [shape: f32[2,8,2,8,8], index: 0, kind: input, shape index: {}]   ;;  %s786_s1 = inlined_call_operand.hbm [shape: f32[2,8,8,16], index: 1, kind: output, shape index: {}]  }
   0x1   :  { %8 = vsyncpa [#allocation3 + $0x1], 0 }
   0x2   :  { %9 = vsyncpa [#allocation4], 0 }
   0x3   :  { %11 = vsyncpa [#allocation4 + $0x1], 0  ;;  %s547_s6 = smov 0   ;;  %s549_s7 = smov 0  }
   0x4   :  { %s551_s8 = smov 0   ;;  %s553_s9 = smov 0  }
   0x5   :  { %s555_s10 = smov 0   ;;  %s557_s11 = smov 0  }
   0x6 LB: > { %s326_s12 = sadd.s32 4294967295, %s529_s11   ;;  %s327_s13 = sadd.s32 4294967294, %s529_s11   ;;  %s529_s11 = sphi %s557_s11, %s17_s11   ;;  %s525_s10 = sphi %s555_s10, %s801_s10   ;;  %s521_s9 = sphi %s553_s9, %s800_s9   ;;  %s517_s8 = sphi %s551_s8, %s799_s8   ;;  %s513_s7 = sphi %s549_s7, %s798_s7   ;;  %s509_s6 = sphi %s547_s6, %s797_s6  }
   0x7   : > { %s29_s14 = sadd.s32 1, %s525_s10  ;;  %s38_s15 = sadd.s32 1, %s517_s8 }
   0x8   : > { %p31_p0 = scmp.ge.s32.totalorder %s29_s14, 2  ;;  %p45_p1 = scmp.ne.s32.totalorder %s517_s8, %s513_s7 }
   0x9   : > { %p46_p2 = scmp.eq.s32.totalorder %s529_s11, 0  ;;  %p51_p3 = scmp.ne.s32.totalorder %s513_s7, %s509_s6 }
   0xa   : > { %s803_s14 = smov (%p31_p0, %s29_s14), 0  ;;  %p52_p5 = scmp.eq.s32.totalorder %s326_s12, 0 }
   0xb   : > { %p588_p4 = por %p46_p2, %p45_p1  ;;  %s33_s17 = ssub.s32 %s525_s10, %s803_s14 }
   0xc   : > { %p77_p6 = scmp.eq.s32.totalorder %s326_s12, 1  ;;  %p36_p7 = scmp.eq.s32.totalorder %s33_s17, 0 }
   0xd   : > { %p594_p8 = por %p52_p5, %p51_p3  ;;  %p83_p10 = scmp.eq.s32.totalorder %s327_s13, 1 }
   0xe   : > { %p598_p9 = por %p77_p6, %p45_p1  ;;  %p363_p13 = scmp.lt.s32.totalorder %s529_s11, 2 }
   0xf   : > { %s603_s20 = scalar_select %p36_p7, %s517_s8, %s38_s15  }
  0x10   : > { %s790_s19 = scalar_select %p598_p9, 1, 0 }
  0x11   : > { %p605_p11 = por %p83_p10, %p51_p3  ;;  %s103_s22 = sand.u32 1, %s517_s8  }
  0x12   : > { %s330_s23 = sshll.u32 %s103_s22, 7  ;;  %s349_s24 = sshll.u32 %s525_s10, 11 }
  0x13   : > { %s791_s21 = scalar_select %p605_p11, 1, 0 }
  0x14   : > { %s616_s27 = scalar_lea.hbm %s785_s0, %s349_s24  ;;  %s107_s28 = scalar_lea.vmem [#allocation2], %s330_s23 }
  0x15   : > { %s117_s29 = sshll.u32 %s107_s28, 4  ;;  %p622_p0 = pnand %p363_p13, %p588_p4  ;;  %s618_s29 = int_to_ptr.vmem [resolvable:$true] %s117_s29 }
  0x16   : > { %s627_s2 = scalar_lea.sflag [#allocation3], %s103_s22  ;;  %s417_s3 = scalar_lea.hbm %s616_s27, 2048 }
  0x17   : > { %p418_p2 = scmp.ne.s32.totalorder %s616_s27, %s417_s3  ;;  %p419_p3 = pneg %p622_p0 }
  0x18   : > { %s422_s12 = scalar_lea.hbm %s785_s0, 4096  ;;  %p423_p4 = scmp.lt.u32.totalorder %s616_s27, %s785_s0 }
  0x19   : > { %p420_p5 = pnand %p419_p3, %p418_p2  ;;  %p424_p7 = scmp.lt.u32.totalorder %s422_s12, %s417_s3 }
  0x1a   : > { %p426_p13 = scmp.lt.u32.totalorder %s417_s3, %s616_s27 }
  0x1b   : > { %p421_p6 = pneg %p420_p5  ;;  %p425_p10 = por %p424_p7, %p423_p4 }
  0x1d   : > { %p427_p12 = por %p426_p13, %p425_p10 }
  0x1f   : > { %p428_p1 = pnand %p427_p12, %p421_p6 }
  0x21   : > { %431 = shalt.err (!%p428_p1)
}
  0x22   : > { %s432_s16 = scalar_lea.vmem %s618_s29, 2048  ;;  %s531_s17 = smov [#allocation2]  }
  0x23   : > { %p433_p2 = scmp.ne.s32.totalorder %s618_s29, %s432_s16  ;;  %s437_s22 = sshll.u32 %s531_s17, 4  ;;  %s438_s22 = int_to_ptr.vmem [resolvable:$false] %s437_s22 }
  0x24   : > { %s439_s23 = scalar_lea.vmem %s438_s22, 4096  ;;  %p440_p9 = scmp.lt.s32.totalorder %s618_s29, %s438_s22 }
  0x25   : > { %p435_p5 = pnand %p433_p2, %p419_p3  ;;  %p441_p4 = scmp.lt.s32.totalorder %s439_s23, %s432_s16 }
  0x27   : > { %p436_p11 = pneg %p435_p5  ;;  %p442_p7 = por %p441_p4, %p440_p9 }
  0x29   : > { %p443_p10 = pnand %p442_p7, %p436_p11 }
  0x2b   : > { %446 = shalt.err (!%p443_p10)
}
  0x2c   : > { %s532_s24 = smov 128   ;;  %s533_s25 = smov 8  }
  0x2d   : > { %358 = dma.hbm_to_vmem [thread:$0]  (!%p622_p0), %s616_s27, 2048, %s618_s29, %s627_s2, %s532_s24, %s532_s24, %s533_s25  }
  0x2e   : > { %p125_p12 = scmp.lt.s32.totalorder %s529_s11, 3  ;;  %p793_p1 = scmp.ge.s32.totalorder %s529_s11, 1 }
  0x30   : > { %p126_p3 = pnand %p793_p1, %p125_p12 }
  0x31   : > { %s659_s26 = sand.u32 (!%p126_p3), 1, %s513_s7  }
  0x32   : > { %129 = sbr.rel (%p126_p3) target bundleno = 202 (0xca), region = 24  ;;  %s334_s28 = sshll.u32 (!%p126_p3), %s659_s26, 7 }
  0x33   : > { %s132_s3 = scalar_lea.sflag (!%p126_p3), [#allocation3], %s659_s26  ;;  %s663_s4 = scalar_lea.vmem (!%p126_p3), [#allocation2], %s334_s28 }
  0x39   : > { %500 = dma.done.wait (%p594_p8), %s132_s3, 2048  }
  0x3a   : > { %502 = vsyncadd (%p594_p8), %s132_s3, 4294965248  ;;  %s335_s27 = sshll.u32 %s659_s26, 6  ;;  %v338_v0 = vld [vmem:[%s663_s4 + $0x28] sm:$0xff]  ;;  %s534_s29 = smov 8   ;;  %vm164_vm0 = vcmask 64512   ;;  %v339_v2 = vld [vmem:[%s663_s4 + $0x38] sm:$0xff] }
  0x3b   : > { %v336_v1 = vld [vmem:[%s663_s4 + $0x8] sm:$0xff]  ;;  %194 = vrot.lane.b32.xlu1 %v338_v0, %s534_s29  ;;  %v337_v3 = vld [vmem:[%s663_s4 + $0x18] sm:$0xff]  ;;  %v158_v4 = vld [vmem:[%s663_s4 + $0x20] sm:$0xff]  ;;  %s679_s18 = scalar_lea.vmem [#allocation5], %s335_s27  ;;  %vm214_vm1 = vcmask 130112   ;;  %s350_s30 = sshll.u32 %s521_s9, 10 }
  0x3c   : > { %190 = vrot.lane.b32.xlu0 %v336_v1, %s534_s29  ;;  %v156_v5 = vld [vmem:[%s663_s4] sm:$0xff]  ;;  %v159_v6 = vld [vmem:[%s663_s4 + $0x30] sm:$0xff]  ;;  %167 = vst.msk [vmem:[%s679_s18 + $0x10] sm:$0xff] %vm164_vm0, %v158_v4  ;;  %s239_s2 = sshll.u32 %s679_s18, 4  ;;  %s729_s13 = scalar_lea.hbm %s786_s1, %s350_s30  ;;  %s731_s2 = int_to_ptr.vmem [resolvable:$true] %s239_s2 }
  0x3d   : > { %165 = vst.msk [vmem:[%s679_s18] sm:$0xff] %vm164_vm0, %v156_v5  ;;  %168 = vst.msk [vmem:[%s679_s18 + $0x18] sm:$0xff] %vm164_vm0, %v159_v6  ;;  %v157_v7 = vld [vmem:[%s663_s4 + $0x10] sm:$0xff]  ;;  %v160_v9 = vld [vmem:[%s663_s4 + $0x40] sm:$0xff]  ;;  %s224_s9 = scalar_lea.sflag [#allocation4], %s659_s26  ;;  %s447_s15 = scalar_lea.vmem %s731_s2, 1024 }
  0x3e   : > { %v161_v8 = vld [vmem:[%s663_s4 + $0x50] sm:$0xff]  ;;  %166 = vst.msk [vmem:[%s679_s18 + $0x8] sm:$0xff] %vm164_vm0, %v157_v7  ;;  %169 = vst.msk [vmem:[%s679_s18 + $0x20] sm:$0xff] %vm164_vm0, %v160_v9  ;;  %v162_v11 = vld [vmem:[%s663_s4 + $0x60] sm:$0xff]  ;;  %p448_p8 = scmp.ne.s32.totalorder %s731_s2, %s447_s15  ;;  %p794_p9 = scmp.ne.s32.totalorder %s790_s19, 0 }
  0x3f   : > { %196 = vrot.lane.b32.xlu1 %v339_v2, %s534_s29  ;;  %170 = vst.msk [vmem:[%s679_s18 + $0x28] sm:$0xff] %vm164_vm0, %v161_v8  ;;  %v163_v10 = vld [vmem:[%s663_s4 + $0x70] sm:$0xff]  ;;  %v341_v12 = vld [vmem:[%s663_s4 + $0x58] sm:$0xff]  ;;  %s535_s16 = smov [#allocation5]  }
  0x40   : > { %192 = vrot.lane.b32.xlu0 %v337_v3, %s534_s29  ;;  %v340_v13 = vld [vmem:[%s663_s4 + $0x48] sm:$0xff]  ;;  %172 = vst.msk [vmem:[%s679_s18 + $0x38] sm:$0xff] %vm164_vm0, %v163_v10  ;;  %171 = vst.msk [vmem:[%s679_s18 + $0x30] sm:$0xff] %vm164_vm0, %v162_v11  ;;  %p449_p11 = pnand %p448_p8, %p794_p9  ;;  %s451_s17 = sshll.u32 %s535_s16, 4  ;;  %s452_s17 = int_to_ptr.vmem [resolvable:$false] %s451_s17 }
  0x41   : > { %v343_v14 = vld [vmem:[%s663_s4 + $0x78] sm:$0xff]  ;;  %v342_v15 = vld [vmem:[%s663_s4 + $0x68] sm:$0xff]  ;;  %s453_s22 = scalar_lea.vmem %s452_s17, 2048  ;;  %p454_p6 = scmp.lt.s32.totalorder %s731_s2, %s452_s17 }
  0x42   : > { %p450_p0 = pneg %p449_p11  ;;  %p455_p13 = scmp.lt.s32.totalorder %s453_s22, %s447_s15 }
  0x43   : > { %200 = vrot.lane.b32.xlu1 %v341_v12, %s534_s29 }
  0x44   : > { %198 = vrot.lane.b32.xlu0 %v340_v13, %s534_s29  ;;  %p456_p2 = por %p455_p13, %p454_p6 }
  0x46   : > { %p457_p5 = pnand %p456_p2, %p450_p0 }
  0x47   : > { %204 = vrot.lane.b32.xlu1 %v343_v14, %s534_s29 }
  0x48   : > { %202 = vrot.lane.b32.xlu0 %v342_v15, %s534_s29 }
  0xad   : > { %v195_v16 = vpop.permute.xlu1 %194 }
  0xae   : > { %v191_v17 = vpop.permute.xlu0 %190  ;;  %217 = vst.msk [vmem:[%s679_s18 + $0x10] sm:$0xff] %vm214_vm1, %v195_v16 }
  0xaf   : > { %215 = vst.msk [vmem:[%s679_s18] sm:$0xff] %vm214_vm1, %v191_v17 }
  0xb1   : > { %v197_v18 = vpop.permute.xlu1 %196 }
  0xb2   : > { %v193_v19 = vpop.permute.xlu0 %192  ;;  %218 = vst.msk [vmem:[%s679_s18 + $0x18] sm:$0xff] %vm214_vm1, %v197_v18 }
  0xb3   : > { %216 = vst.msk [vmem:[%s679_s18 + $0x8] sm:$0xff] %vm214_vm1, %v193_v19 }
  0xb5   : > { %v201_v20 = vpop.permute.xlu1 %200 }
  0xb6   : > { %v199_v21 = vpop.permute.xlu0 %198  ;;  %220 = vst.msk [vmem:[%s679_s18 + $0x28] sm:$0xff] %vm214_vm1, %v201_v20 }
  0xb7   : > { %219 = vst.msk [vmem:[%s679_s18 + $0x20] sm:$0xff] %vm214_vm1, %v199_v21 }
  0xb9   : > { %v205_v22 = vpop.permute.xlu1 %204 }
  0xba   : > { %v203_v23 = vpop.permute.xlu0 %202  ;;  %222 = vst.msk [vmem:[%s679_s18 + $0x38] sm:$0xff] %vm214_vm1, %v205_v22 }
  0xbb   : > { %221 = vst.msk [vmem:[%s679_s18 + $0x30] sm:$0xff] %vm214_vm1, %v203_v23 }
  0xbc   : > { %460 = shalt.err (!%p457_p5)
}
  0xbd   : > { %s461_s23 = scalar_lea.hbm %s729_s13, 1024  ;;  %s465_s28 = scalar_lea.hbm %s786_s1, 2048 }
  0xbe   : > { %p462_p4 = scmp.ne.s32.totalorder %s729_s13, %s461_s23  ;;  %p466_p12 = scmp.lt.u32.totalorder %s729_s13, %s786_s1 }
  0xbf   : > { %p467_p1 = scmp.lt.u32.totalorder %s465_s28, %s461_s23  ;;  %p469_p8 = scmp.lt.u32.totalorder %s461_s23, %s729_s13 }
  0xc0   : > { %p463_p7 = pnand %p462_p4, %p794_p9 }
  0xc1   : > { %p468_p3 = por %p467_p1, %p466_p12 }
  0xc2   : > { %p464_p10 = pneg %p463_p7 }
  0xc3   : > { %p470_p11 = por %p469_p8, %p468_p3 }
  0xc5   : > { %p471_p0 = pnand %p470_p11, %p464_p10 }
  0xc7   : > { %474 = shalt.err (!%p471_p0)
}
  0xc8   : > { %s536_s27 = smov 128  }
  0xc9   : > { %353 = dma.vmem_to_hbm [thread:$0]  (%p794_p9), %s731_s2, 1024, %s729_s13, %s224_s9, %s536_s27, %s536_s27, %s534_s29  }
  0xca PF: > { %s254_s18 = sand.u32 1, %s509_s6   ;;  %p795_p6 = scmp.ne.s32.totalorder %s791_s21, 0 }
  0xcb   : > { %p796_p13 = scmp.ge.s32.totalorder %s529_s11, 2  ;;  %s255_s30 = scalar_lea.sflag [#allocation4], %s254_s18 }
  0xcd   : > { %p360_p2 = pnand %p796_p13, %p795_p6 }
  0xcf   : > { %504 = dma.done.wait (!%p360_p2), %s255_s30, 1024  }
  0xd0   : > { %506 = vsyncadd (!%p360_p2), %s255_s30, 4294966272  ;;  %s17_s11 = sadd.s32 1, %s529_s11   ;;  %s797_s6 = smov %s513_s7 }
  0xd1   : > { %p14_p5 = scmp.ge.s32.totalorder %s17_s11, 4   ;;  %s798_s7 = smov %s517_s8 }
  0xd2   : > { %s799_s8 = smov %s603_s20  ;;  %s800_s9 = smov %s525_s10 }
  0xd3   : > { %s801_s10 = smov %s803_s14  ;;  %16 = sbr.rel (!%p14_p5) target bundleno = 6 (0x6), region = 70 }
  0xda   :  { %260 = vsyncpa [#allocation3], 1 }
  0xdb   :  { %262 = vsyncpa [#allocation3 + $0x1], 1 }
  0xdc   :  { %263 = vsyncpa [#allocation4], 1 }
  0xdd   :  { %265 = vsyncpa [#allocation4 + $0x1], 1 }

</bundles_post_ra>
